<compile_context>
chip_gen: v7x
topology: tpu7x:2x2x1
jax: 0.10.0
libtpu: 0.0.40
codegen_flags: <defaults>
</compile_context>

<pallas_src>
import functools

import numpy as np
import jax
import jax.numpy as jnp
from jax import lax
from jax.experimental import pallas as pl
from jax.experimental.pallas import tpu as pltpu


# ----------------------------------------------------------------------------
# Kernel
# ----------------------------------------------------------------------------
def _dmlp_kernel(x_ref, w0_ref, w1_ref, b1_ref, w2_ref, b2_ref, o_ref, *, mm_dtype):
    # x_ref : (dim, L)            L = (TH+3)*(W+2): zero-padded window, rows
    #                             flattened so padded pixels sit on the lane axis
    # w0_ref: (growth, dim, 9)    depthwise 3x3 taps, [group, in_channel, tap]
    # w1_ref: (growth, hidden, dim)  1x1 conv #1, split by input group
    # b1_ref: (hidden, 1)         b1 + w1 @ b0 (conv_0[0] bias folded in)
    # w2_ref: (dim, hidden)       1x1 conv #2
    # b2_ref: (dim, 1)
    # o_ref : (dim, TH, W)        NCHW output row-tile (W on the lane axis)
    dim, TH, W = o_ref.shape
    growth = w0_ref.shape[0]
    Wp = W + 2                    # padded row width
    Pp = TH * Wp                  # padded-pixel count; 2 junk columns per row

    w0 = w0_ref[...]              # tiny (growth, dim, 9); stays resident

    # ---- grouped (depthwise) 3x3 conv ---------------------------------------
    # One accumulator per output group, shape (dim, Pp): lane axis = padded
    # pixels (lane-dense regardless of dim/hidden), sublanes = input channels.
    # Each tap is a shifted flat window read straight from the ref, so only one
    # shifted slab is live at a time (no 9 materialized copies).
    accs = [jnp.zeros((dim, Pp), jnp.float32) for _ in range(growth)]
    for dy in range(3):
        for dx in range(3):
            xs = x_ref[:, pl.ds(dy * Wp + dx, Pp)]          # (dim, Pp)
            tap = dy * 3 + dx
            for g in range(growth):
                accs[g] = accs[g] + w0[g, :, tap:tap + 1] * xs
    # conv_0[0]'s bias is folded into b1 (see wrapper), so no bias add here.

    # ---- 1x1 conv #1 (hidden <- hidden): pixels stream on the MXU lane axis --
    y = jnp.dot(w1_ref[0].astype(mm_dtype), accs[0].astype(mm_dtype),
                preferred_element_type=jnp.float32)
    for g in range(1, growth):
        y = y + jnp.dot(w1_ref[g].astype(mm_dtype), accs[g].astype(mm_dtype),
                        preferred_element_type=jnp.float32)
    y = y + b1_ref[...]                                      # (hidden, Pp)

    # Exact erf GELU (matches torch.nn.GELU()).  A tanh-approx GELU would move
    # this to the EUP slot if the VPU ever becomes the bottleneck.
    y = 0.5 * y * (1.0 + lax.erf(y * np.float32(1.0 / np.sqrt(2.0))))

    # ---- 1x1 conv #2 (dim <- hidden) ----------------------------------------
    z = jnp.dot(w2_ref[...].astype(mm_dtype), y.astype(mm_dtype),
                preferred_element_type=jnp.float32)
    z = z + b2_ref[...]                                      # (dim, Pp)

    # ---- store valid pixels, NCHW, W on the lane axis (lane-dense HBM block) -
    for r in range(TH):
        o_ref[:, r, :] = z[:, r * Wp:r * Wp + W].astype(o_ref.dtype)


# ----------------------------------------------------------------------------
# Tiling / VMEM sizing helpers (budgeted against v7x's 64 MiB VMEM)
# ----------------------------------------------------------------------------
def _vmem_bytes_estimate(TH, W, dim, hidden, growth):
    f32 = 4
    L = (TH + 3) * (W + 2)
    Pp = TH * (W + 2)
    io = 2 * dim * L * f32 + 2 * dim * TH * W * f32          # double-buffered blocks
    wts = 2 * f32 * (growth * dim * 9 + growth * hidden * dim +
                     hidden + dim * hidden + dim)
    act = f32 * Pp * (growth * dim + 2 * hidden + 2 * dim)   # accs / y / gelu / z
    return io + wts + act


def _choose_tile_h(H, W, dim, hidden, growth,
                   budget_bytes=40 * 1024 * 1024, max_th=32):
    """Row-tile height: a multiple of 8 dividing H (sublane constraint on the
    NCHW output block), as large as the v7x-safe VMEM budget allows, preferring
    >= 2 row tiles so the (batch, row-tile) grid pipelines and can shard across
    both v7x TensorCores even at batch 1."""
    cands = [th for th in range(8, min(H, max_th) + 1, 8) if H % th == 0]
    if not cands:
        return H                          # full-height block (always legal)
    cands.sort(reverse=True)
    ok = [th for th in cands
          if _vmem_bytes_estimate(th, W, dim, hidden, growth) <= budget_bytes]
    if not ok:
        return cands[-1]
    multi = [th for th in ok if H // th >= 2]
    return multi[0] if multi else ok[0]


def _vmem_limit_bytes(TH, W, dim, hidden, growth):
    est = _vmem_bytes_estimate(TH, W, dim, hidden, growth)
    # generous headroom, but never above what v7x physically has (64 MiB)
    return int(min(60 * 1024 * 1024, max(4 * est, 16 * 1024 * 1024)))


# ----------------------------------------------------------------------------
# Wrapper
# ----------------------------------------------------------------------------
def dmlp_pallas(x_nchw, params, growth_rate=2.0, mm_dtype=jnp.float32):
    """x_nchw: (B, dim, H, W) float32.  Returns (B, dim, H, W)."""
    w0, b0, w1, b1, w2, b2 = params
    B, dim, H, W = x_nchw.shape
    hidden = int(dim * growth_rate)
    if hidden % dim != 0:
        # PyTorch Conv2d(dim, hidden, groups=dim) needs hidden % dim == 0 anyway.
        raise ValueError(f"grouped 3x3 conv requires hidden % dim == 0, "
                         f"got dim={dim}, hidden={hidden}")
    growth = hidden // dim

    TH = _choose_tile_h(H, W, dim, hidden, growth)
    nT = H // TH
    Wp = W + 2
    L = (TH + 3) * Wp            # TH+2 halo rows + 1 slack row for flat tap reads

    # ---- single fused prep copy: zero-pad + per-tile halo row windows.
    # No channel repeat (2x inflation) and no layout transposes in the wrapper.
    xpad = jnp.pad(x_nchw, ((0, 0), (0, 0), (1, 2), (1, 1)))        # (B, dim, H+3, W+2)
    row_idx = (jnp.arange(nT) * TH)[:, None] + jnp.arange(TH + 3)[None, :]
    xt = xpad[:, :, row_idx, :]                                     # (B, dim, nT, TH+3, Wp)
    xt = jnp.transpose(xt, (0, 2, 1, 3, 4)).reshape(B, nT, dim, L)  # (B, nT, dim, L)

    # ---- weight re-layout (tiny, done once) ----
    # Output channel o of the grouped conv = c*growth + g reads input channel c.
    w0g = w0.reshape(hidden, 9).reshape(dim, growth, 9).transpose(1, 0, 2)  # [g, c, tap]
    w1m = w1[:, :, 0, 0]                                                    # (hidden, hidden)
    w1g = w1m.reshape(hidden, dim, growth).transpose(2, 0, 1)               # [g, out, c]
    b1e = (w1m @ b0 + b1).reshape(hidden, 1)     # fold conv_0[0] bias through conv_0[1]
    w2m = w2[:, :, 0, 0]                                                    # (dim, hidden)
    b2r = b2.reshape(dim, 1)

    kernel = functools.partial(_dmlp_kernel, mm_dtype=mm_dtype)

    out = pl.pallas_call(
        kernel,
        out_shape=jax.ShapeDtypeStruct((B, dim, H, W), x_nchw.dtype),
        grid_spec=pltpu.PrefetchScalarGridSpec(
            num_scalar_prefetch=0,
            grid=(B, nT),
            in_specs=[
                # activation row-tile (flattened padded window)
                pl.BlockSpec((None, None, dim, L), lambda b, t: (b, t, 0, 0)),
                # weights / biases: constant index_maps -> kept resident, not
                # re-DMA'd per grid step.
                pl.BlockSpec((growth, dim, 9), lambda b, t: (0, 0, 0)),
                pl.BlockSpec((growth, hidden, dim), lambda b, t: (0, 0, 0)),
                pl.BlockSpec((hidden, 1), lambda b, t: (0, 0)),
                pl.BlockSpec((dim, hidden), lambda b, t: (0, 0)),
                pl.BlockSpec((dim, 1), lambda b, t: (0, 0)),
            ],
            out_specs=pl.BlockSpec((None, dim, TH, W), lambda b, t: (b, 0, t, 0)),
        ),
        compiler_params=pltpu.CompilerParams(
            dimension_semantics=("parallel", "parallel"),
            vmem_limit_bytes=_vmem_limit_bytes(TH, W, dim, hidden, growth)),
    )(xt, w0g, w1g, b1e, w2m, b2r)

    return out                                                # already NCHW


# ----------------------------------------------------------------------------
# Pure-JAX reference (same math as the PyTorch module) for the sanity check.
# ----------------------------------------------------------------------------
def dmlp_reference(x_nchw, params, growth_rate=2.0):
    w0, b0, w1, b1, w2, b2 = params
    B, dim, H, W = x_nchw.shape
    hidden = int(dim * growth_rate)
    growth = hidden // dim

    x = jnp.transpose(x_nchw, (0, 2, 3, 1))
    x_rep = jnp.repeat(x, growth, axis=-1)
    xp = jnp.pad(x_rep, ((0, 0), (1, 1), (1, 1), (0, 0)))
    w0_tap = jnp.transpose(w0.reshape(hidden, 9), (1, 0))

    acc = jnp.zeros((B, H, W, hidden), jnp.float32)
    tap = 0
    for dy in range(3):
        for dx in range(3):
            acc = acc + xp[:, dy:dy + H, dx:dx + W, :] * w0_tap[tap][None, None, None, :]
            tap += 1
    acc = acc + b0[None, None, None, :]

    y = acc.reshape(B * H * W, hidden) @ jnp.transpose(w1[:, :, 0, 0]) + b1
    y = 0.5 * y * (1.0 + lax.erf(y / jnp.sqrt(2.0)))
    z = y @ jnp.transpose(w2[:, :, 0, 0]) + b2
    return jnp.transpose(z.reshape(B, H, W, dim), (0, 3, 1, 2))


def init_params(key, dim, growth_rate=2.0):
    hidden = int(dim * growth_rate)
    ks = jax.random.split(key, 6)
    # Shapes mirror the PyTorch module's parameters; deterministic synthetic init.
    w0 = jax.random.normal(ks[0], (hidden, 1, 3, 3), jnp.float32) * 0.2   # depthwise 3x3
    b0 = jax.random.normal(ks[1], (hidden,), jnp.float32) * 0.05
    w1 = jax.random.normal(ks[2], (hidden, hidden, 1, 1), jnp.float32) * 0.2
    b1 = jax.random.normal(ks[3], (hidden,), jnp.float32) * 0.05
    w2 = jax.random.normal(ks[4], (dim, hidden, 1, 1), jnp.float32) * 0.2
    b2 = jax.random.normal(ks[5], (dim,), jnp.float32) * 0.05
    return (w0, b0, w1, b1, w2, b2)


if __name__ == "__main__":
    key = jax.random.PRNGKey(0)
    k_x, k_p = jax.random.split(key)

    B, dim, H, W = 2, 4, 16, 16
    growth_rate = 2.0

    x = jax.random.normal(k_x, (B, dim, H, W), jnp.float32)
    params = init_params(k_p, dim, growth_rate)

    fwd = jax.jit(functools.partial(dmlp_pallas, growth_rate=growth_rate))
    out = jax.block_until_ready(fwd(x, params))

    ref = jax.block_until_ready(dmlp_reference(x, params, growth_rate))
    np.testing.assert_allclose(np.asarray(out), np.asarray(ref), rtol=1e-4, atol=1e-5)

    print("KERNEL_OK")
</pallas_src>

<mosaic_0001>
module attributes {stable_mosaic.version = 11 : i64} {
  func.func @_dmlp_kernel(%arg0: i32, %arg1: i32, %arg2: memref<1x1x4x198xf32, #tpu.memory_space<vmem>>, %arg3: memref<2x4x9xf32, #tpu.memory_space<vmem>>, %arg4: memref<2x8x4xf32, #tpu.memory_space<vmem>>, %arg5: memref<8x1xf32, #tpu.memory_space<vmem>>, %arg6: memref<4x8xf32, #tpu.memory_space<vmem>>, %arg7: memref<4x1xf32, #tpu.memory_space<vmem>>, %arg8: memref<1x4x8x16xf32, #tpu.memory_space<vmem>>) attributes {dimension_semantics = [#tpu.dimension_semantics<parallel>, #tpu.dimension_semantics<parallel>], iteration_bounds = array<i64: 2, 2>, scalar_prefetch = 0 : i64, scratch_operands = 0 : i64, tpu.core_type = #tpu.core_type<tc>, window_params = [{transform_indices = @transform_0, window_bounds = array<i64: 1, 1, 4, 198>}, {pipeline_mode = #tpu.pipeline_mode<synchronous>, transform_indices = @transform_1, window_bounds = array<i64: 2, 4, 9>}, {pipeline_mode = #tpu.pipeline_mode<synchronous>, transform_indices = @transform_2, window_bounds = array<i64: 2, 8, 4>}, {pipeline_mode = #tpu.pipeline_mode<synchronous>, transform_indices = @transform_3, window_bounds = array<i64: 8, 1>}, {pipeline_mode = #tpu.pipeline_mode<synchronous>, transform_indices = @transform_4, window_bounds = array<i64: 4, 8>}, {pipeline_mode = #tpu.pipeline_mode<synchronous>, transform_indices = @transform_5, window_bounds = array<i64: 4, 1>}, {transform_indices = @transform_6, window_bounds = array<i64: 1, 4, 8, 16>}]} {
    %c0 = arith.constant 0 : index
    %c0_0 = arith.constant 0 : index
    %c0_1 = arith.constant 0 : index
    %0 = vector.load %arg3[%c0, %c0_0, %c0_1] : memref<2x4x9xf32, #tpu.memory_space<vmem>>, vector<2x4x9xf32>
    %cst = arith.constant 0.000000e+00 : f32
    %1 = vector.broadcast %cst : f32 to vector<4x144xf32>
    %cst_2 = arith.constant 0.000000e+00 : f32
    %2 = vector.broadcast %cst_2 : f32 to vector<4x144xf32>
    %c0_3 = arith.constant 0 : index
    %c0_4 = arith.constant 0 : index
    %c0_5 = arith.constant 0 : index
    %c0_6 = arith.constant 0 : index
    %3 = vector.load %arg2[%c0_3, %c0_4, %c0_5, %c0_6] : memref<1x1x4x198xf32, #tpu.memory_space<vmem>>, vector<1x1x4x144xf32>
    %4 = vector.shape_cast %3 : vector<1x1x4x144xf32> to vector<4x144xf32>
    %5 = vector.extract_strided_slice %0 {offsets = [0, 0, 0], sizes = [1, 4, 1], strides = [1, 1, 1]} : vector<2x4x9xf32> to vector<1x4x1xf32>
    %6 = vector.shape_cast %5 : vector<1x4x1xf32> to vector<4x1xf32>
    %7 = vector.broadcast %6 : vector<4x1xf32> to vector<4x144xf32>
    %8 = arith.mulf %7, %4 : vector<4x144xf32>
    %9 = arith.addf %1, %8 : vector<4x144xf32>
    %10 = vector.extract_strided_slice %0 {offsets = [1, 0, 0], sizes = [1, 4, 1], strides = [1, 1, 1]} : vector<2x4x9xf32> to vector<1x4x1xf32>
    %11 = vector.shape_cast %10 : vector<1x4x1xf32> to vector<4x1xf32>
    %12 = vector.broadcast %11 : vector<4x1xf32> to vector<4x144xf32>
    %13 = arith.mulf %12, %4 : vector<4x144xf32>
    %14 = arith.addf %2, %13 : vector<4x144xf32>
    %c0_7 = arith.constant 0 : index
    %c0_8 = arith.constant 0 : index
    %c0_9 = arith.constant 0 : index
    %c1 = arith.constant 1 : index
    %15 = vector.load %arg2[%c0_7, %c0_8, %c0_9, %c1] : memref<1x1x4x198xf32, #tpu.memory_space<vmem>>, vector<1x1x4x144xf32>
    %16 = vector.shape_cast %15 : vector<1x1x4x144xf32> to vector<4x144xf32>
    %17 = vector.extract_strided_slice %0 {offsets = [0, 0, 1], sizes = [1, 4, 1], strides = [1, 1, 1]} : vector<2x4x9xf32> to vector<1x4x1xf32>
    %18 = vector.shape_cast %17 : vector<1x4x1xf32> to vector<4x1xf32>
    %19 = vector.broadcast %18 : vector<4x1xf32> to vector<4x144xf32>
    %20 = arith.mulf %19, %16 : vector<4x144xf32>
    %21 = arith.addf %9, %20 : vector<4x144xf32>
    %22 = vector.extract_strided_slice %0 {offsets = [1, 0, 1], sizes = [1, 4, 1], strides = [1, 1, 1]} : vector<2x4x9xf32> to vector<1x4x1xf32>
    %23 = vector.shape_cast %22 : vector<1x4x1xf32> to vector<4x1xf32>
    %24 = vector.broadcast %23 : vector<4x1xf32> to vector<4x144xf32>
    %25 = arith.mulf %24, %16 : vector<4x144xf32>
    %26 = arith.addf %14, %25 : vector<4x144xf32>
    %c0_10 = arith.constant 0 : index
    %c0_11 = arith.constant 0 : index
    %c0_12 = arith.constant 0 : index
    %c2 = arith.constant 2 : index
    %27 = vector.load %arg2[%c0_10, %c0_11, %c0_12, %c2] : memref<1x1x4x198xf32, #tpu.memory_space<vmem>>, vector<1x1x4x144xf32>
    %28 = vector.shape_cast %27 : vector<1x1x4x144xf32> to vector<4x144xf32>
    %29 = vector.extract_strided_slice %0 {offsets = [0, 0, 2], sizes = [1, 4, 1], strides = [1, 1, 1]} : vector<2x4x9xf32> to vector<1x4x1xf32>
    %30 = vector.shape_cast %29 : vector<1x4x1xf32> to vector<4x1xf32>
    %31 = vector.broadcast %30 : vector<4x1xf32> to vector<4x144xf32>
    %32 = arith.mulf %31, %28 : vector<4x144xf32>
    %33 = arith.addf %21, %32 : vector<4x144xf32>
    %34 = vector.extract_strided_slice %0 {offsets = [1, 0, 2], sizes = [1, 4, 1], strides = [1, 1, 1]} : vector<2x4x9xf32> to vector<1x4x1xf32>
    %35 = vector.shape_cast %34 : vector<1x4x1xf32> to vector<4x1xf32>
    %36 = vector.broadcast %35 : vector<4x1xf32> to vector<4x144xf32>
    %37 = arith.mulf %36, %28 : vector<4x144xf32>
    %38 = arith.addf %26, %37 : vector<4x144xf32>
    %c0_13 = arith.constant 0 : index
    %c0_14 = arith.constant 0 : index
    %c0_15 = arith.constant 0 : index
    %c18 = arith.constant 18 : index
    %39 = vector.load %arg2[%c0_13, %c0_14, %c0_15, %c18] : memref<1x1x4x198xf32, #tpu.memory_space<vmem>>, vector<1x1x4x144xf32>
    %40 = vector.shape_cast %39 : vector<1x1x4x144xf32> to vector<4x144xf32>
    %41 = vector.extract_strided_slice %0 {offsets = [0, 0, 3], sizes = [1, 4, 1], strides = [1, 1, 1]} : vector<2x4x9xf32> to vector<1x4x1xf32>
    %42 = vector.shape_cast %41 : vector<1x4x1xf32> to vector<4x1xf32>
    %43 = vector.broadcast %42 : vector<4x1xf32> to vector<4x144xf32>
    %44 = arith.mulf %43, %40 : vector<4x144xf32>
    %45 = arith.addf %33, %44 : vector<4x144xf32>
    %46 = vector.extract_strided_slice %0 {offsets = [1, 0, 3], sizes = [1, 4, 1], strides = [1, 1, 1]} : vector<2x4x9xf32> to vector<1x4x1xf32>
    %47 = vector.shape_cast %46 : vector<1x4x1xf32> to vector<4x1xf32>
    %48 = vector.broadcast %47 : vector<4x1xf32> to vector<4x144xf32>
    %49 = arith.mulf %48, %40 : vector<4x144xf32>
    %50 = arith.addf %38, %49 : vector<4x144xf32>
    %c0_16 = arith.constant 0 : index
    %c0_17 = arith.constant 0 : index
    %c0_18 = arith.constant 0 : index
    %c19 = arith.constant 19 : index
    %51 = vector.load %arg2[%c0_16, %c0_17, %c0_18, %c19] : memref<1x1x4x198xf32, #tpu.memory_space<vmem>>, vector<1x1x4x144xf32>
    %52 = vector.shape_cast %51 : vector<1x1x4x144xf32> to vector<4x144xf32>
    %53 = vector.extract_strided_slice %0 {offsets = [0, 0, 4], sizes = [1, 4, 1], strides = [1, 1, 1]} : vector<2x4x9xf32> to vector<1x4x1xf32>
    %54 = vector.shape_cast %53 : vector<1x4x1xf32> to vector<4x1xf32>
    %55 = vector.broadcast %54 : vector<4x1xf32> to vector<4x144xf32>
    %56 = arith.mulf %55, %52 : vector<4x144xf32>
    %57 = arith.addf %45, %56 : vector<4x144xf32>
    %58 = vector.extract_strided_slice %0 {offsets = [1, 0, 4], sizes = [1, 4, 1], strides = [1, 1, 1]} : vector<2x4x9xf32> to vector<1x4x1xf32>
    %59 = vector.shape_cast %58 : vector<1x4x1xf32> to vector<4x1xf32>
    %60 = vector.broadcast %59 : vector<4x1xf32> to vector<4x144xf32>
    %61 = arith.mulf %60, %52 : vector<4x144xf32>
    %62 = arith.addf %50, %61 : vector<4x144xf32>
    %c0_19 = arith.constant 0 : index
    %c0_20 = arith.constant 0 : index
    %c0_21 = arith.constant 0 : index
    %c20 = arith.constant 20 : index
    %63 = vector.load %arg2[%c0_19, %c0_20, %c0_21, %c20] : memref<1x1x4x198xf32, #tpu.memory_space<vmem>>, vector<1x1x4x144xf32>
    %64 = vector.shape_cast %63 : vector<1x1x4x144xf32> to vector<4x144xf32>
    %65 = vector.extract_strided_slice %0 {offsets = [0, 0, 5], sizes = [1, 4, 1], strides = [1, 1, 1]} : vector<2x4x9xf32> to vector<1x4x1xf32>
    %66 = vector.shape_cast %65 : vector<1x4x1xf32> to vector<4x1xf32>
    %67 = vector.broadcast %66 : vector<4x1xf32> to vector<4x144xf32>
    %68 = arith.mulf %67, %64 : vector<4x144xf32>
    %69 = arith.addf %57, %68 : vector<4x144xf32>
    %70 = vector.extract_strided_slice %0 {offsets = [1, 0, 5], sizes = [1, 4, 1], strides = [1, 1, 1]} : vector<2x4x9xf32> to vector<1x4x1xf32>
    %71 = vector.shape_cast %70 : vector<1x4x1xf32> to vector<4x1xf32>
    %72 = vector.broadcast %71 : vector<4x1xf32> to vector<4x144xf32>
    %73 = arith.mulf %72, %64 : vector<4x144xf32>
    %74 = arith.addf %62, %73 : vector<4x144xf32>
    %c0_22 = arith.constant 0 : index
    %c0_23 = arith.constant 0 : index
    %c0_24 = arith.constant 0 : index
    %c36 = arith.constant 36 : index
    %75 = vector.load %arg2[%c0_22, %c0_23, %c0_24, %c36] : memref<1x1x4x198xf32, #tpu.memory_space<vmem>>, vector<1x1x4x144xf32>
    %76 = vector.shape_cast %75 : vector<1x1x4x144xf32> to vector<4x144xf32>
    %77 = vector.extract_strided_slice %0 {offsets = [0, 0, 6], sizes = [1, 4, 1], strides = [1, 1, 1]} : vector<2x4x9xf32> to vector<1x4x1xf32>
    %78 = vector.shape_cast %77 : vector<1x4x1xf32> to vector<4x1xf32>
    %79 = vector.broadcast %78 : vector<4x1xf32> to vector<4x144xf32>
    %80 = arith.mulf %79, %76 : vector<4x144xf32>
    %81 = arith.addf %69, %80 : vector<4x144xf32>
    %82 = vector.extract_strided_slice %0 {offsets = [1, 0, 6], sizes = [1, 4, 1], strides = [1, 1, 1]} : vector<2x4x9xf32> to vector<1x4x1xf32>
    %83 = vector.shape_cast %82 : vector<1x4x1xf32> to vector<4x1xf32>
    %84 = vector.broadcast %83 : vector<4x1xf32> to vector<4x144xf32>
    %85 = arith.mulf %84, %76 : vector<4x144xf32>
    %86 = arith.addf %74, %85 : vector<4x144xf32>
    %c0_25 = arith.constant 0 : index
    %c0_26 = arith.constant 0 : index
    %c0_27 = arith.constant 0 : index
    %c37 = arith.constant 37 : index
    %87 = vector.load %arg2[%c0_25, %c0_26, %c0_27, %c37] : memref<1x1x4x198xf32, #tpu.memory_space<vmem>>, vector<1x1x4x144xf32>
    %88 = vector.shape_cast %87 : vector<1x1x4x144xf32> to vector<4x144xf32>
    %89 = vector.extract_strided_slice %0 {offsets = [0, 0, 7], sizes = [1, 4, 1], strides = [1, 1, 1]} : vector<2x4x9xf32> to vector<1x4x1xf32>
    %90 = vector.shape_cast %89 : vector<1x4x1xf32> to vector<4x1xf32>
    %91 = vector.broadcast %90 : vector<4x1xf32> to vector<4x144xf32>
    %92 = arith.mulf %91, %88 : vector<4x144xf32>
    %93 = arith.addf %81, %92 : vector<4x144xf32>
    %94 = vector.extract_strided_slice %0 {offsets = [1, 0, 7], sizes = [1, 4, 1], strides = [1, 1, 1]} : vector<2x4x9xf32> to vector<1x4x1xf32>
    %95 = vector.shape_cast %94 : vector<1x4x1xf32> to vector<4x1xf32>
    %96 = vector.broadcast %95 : vector<4x1xf32> to vector<4x144xf32>
    %97 = arith.mulf %96, %88 : vector<4x144xf32>
    %98 = arith.addf %86, %97 : vector<4x144xf32>
    %c0_28 = arith.constant 0 : index
    %c0_29 = arith.constant 0 : index
    %c0_30 = arith.constant 0 : index
    %c38 = arith.constant 38 : index
    %99 = vector.load %arg2[%c0_28, %c0_29, %c0_30, %c38] : memref<1x1x4x198xf32, #tpu.memory_space<vmem>>, vector<1x1x4x144xf32>
    %100 = vector.shape_cast %99 : vector<1x1x4x144xf32> to vector<4x144xf32>
    %101 = vector.extract_strided_slice %0 {offsets = [0, 0, 8], sizes = [1, 4, 1], strides = [1, 1, 1]} : vector<2x4x9xf32> to vector<1x4x1xf32>
    %102 = vector.shape_cast %101 : vector<1x4x1xf32> to vector<4x1xf32>
    %103 = vector.broadcast %102 : vector<4x1xf32> to vector<4x144xf32>
    %104 = arith.mulf %103, %100 : vector<4x144xf32>
    %105 = arith.addf %93, %104 : vector<4x144xf32>
    %106 = vector.extract_strided_slice %0 {offsets = [1, 0, 8], sizes = [1, 4, 1], strides = [1, 1, 1]} : vector<2x4x9xf32> to vector<1x4x1xf32>
    %107 = vector.shape_cast %106 : vector<1x4x1xf32> to vector<4x1xf32>
    %108 = vector.broadcast %107 : vector<4x1xf32> to vector<4x144xf32>
    %109 = arith.mulf %108, %100 : vector<4x144xf32>
    %110 = arith.addf %98, %109 : vector<4x144xf32>
    %c0_31 = arith.constant 0 : index
    %c0_32 = arith.constant 0 : index
    %c0_33 = arith.constant 0 : index
    %111 = vector.load %arg4[%c0_31, %c0_32, %c0_33] : memref<2x8x4xf32, #tpu.memory_space<vmem>>, vector<1x8x4xf32>
    %112 = vector.shape_cast %111 : vector<1x8x4xf32> to vector<8x4xf32>
    %cst_34 = arith.constant dense<0.000000e+00> : vector<8x144xf32>
    %113 = tpu.matmul %112, %105, %cst_34 {dimension_numbers = #tpu.dot_dimension_numbers<[1], [0], [0], [1], [0, 0, 1, 1], [], []>} : vector<8x4xf32>, vector<4x144xf32>, vector<8x144xf32> -> vector<8x144xf32>
    %c1_35 = arith.constant 1 : index
    %c0_36 = arith.constant 0 : index
    %c0_37 = arith.constant 0 : index
    %114 = vector.load %arg4[%c1_35, %c0_36, %c0_37] : memref<2x8x4xf32, #tpu.memory_space<vmem>>, vector<1x8x4xf32>
    %115 = vector.shape_cast %114 : vector<1x8x4xf32> to vector<8x4xf32>
    %cst_38 = arith.constant dense<0.000000e+00> : vector<8x144xf32>
    %116 = tpu.matmul %115, %110, %cst_38 {dimension_numbers = #tpu.dot_dimension_numbers<[1], [0], [0], [1], [0, 0, 1, 1], [], []>} : vector<8x4xf32>, vector<4x144xf32>, vector<8x144xf32> -> vector<8x144xf32>
    %117 = arith.addf %113, %116 : vector<8x144xf32>
    %c0_39 = arith.constant 0 : index
    %c0_40 = arith.constant 0 : index
    %118 = vector.load %arg5[%c0_39, %c0_40] : memref<8x1xf32, #tpu.memory_space<vmem>>, vector<8x1xf32>
    %119 = vector.broadcast %118 : vector<8x1xf32> to vector<8x144xf32>
    %120 = arith.addf %117, %119 : vector<8x144xf32>
    %cst_41 = arith.constant 5.000000e-01 : f32
    %121 = vector.broadcast %cst_41 : f32 to vector<8x144xf32>
    %122 = arith.mulf %121, %120 : vector<8x144xf32>
    %cst_42 = arith.constant 0.707106769 : f32
    %123 = vector.broadcast %cst_42 : f32 to vector<8x144xf32>
    %124 = arith.mulf %120, %123 : vector<8x144xf32>
    %125 = math.erf %124 : vector<8x144xf32>
    %cst_43 = arith.constant 1.000000e+00 : f32
    %126 = vector.broadcast %cst_43 : f32 to vector<8x144xf32>
    %127 = arith.addf %126, %125 : vector<8x144xf32>
    %128 = arith.mulf %122, %127 : vector<8x144xf32>
    %c0_44 = arith.constant 0 : index
    %c0_45 = arith.constant 0 : index
    %129 = vector.load %arg6[%c0_44, %c0_45] : memref<4x8xf32, #tpu.memory_space<vmem>>, vector<4x8xf32>
    %cst_46 = arith.constant dense<0.000000e+00> : vector<4x144xf32>
    %130 = tpu.matmul %129, %128, %cst_46 {dimension_numbers = #tpu.dot_dimension_numbers<[1], [0], [0], [1], [0, 0, 1, 1], [], []>} : vector<4x8xf32>, vector<8x144xf32>, vector<4x144xf32> -> vector<4x144xf32>
    %c0_47 = arith.constant 0 : index
    %c0_48 = arith.constant 0 : index
    %131 = vector.load %arg7[%c0_47, %c0_48] : memref<4x1xf32, #tpu.memory_space<vmem>>, vector<4x1xf32>
    %132 = vector.broadcast %131 : vector<4x1xf32> to vector<4x144xf32>
    %133 = arith.addf %130, %132 : vector<4x144xf32>
    %134 = vector.extract_strided_slice %133 {offsets = [0, 0], sizes = [4, 16], strides = [1, 1]} : vector<4x144xf32> to vector<4x16xf32>
    %c0_49 = arith.constant 0 : index
    %c0_50 = arith.constant 0 : index
    %c0_51 = arith.constant 0 : index
    %c0_52 = arith.constant 0 : index
    %135 = vector.load %arg8[%c0_49, %c0_50, %c0_51, %c0_52] : memref<1x4x8x16xf32, #tpu.memory_space<vmem>>, vector<1x4x1x16xf32>
    %136 = vector.shape_cast %135 : vector<1x4x1x16xf32> to vector<4x16xf32>
    %137 = vector.shape_cast %134 : vector<4x16xf32> to vector<1x4x1x16xf32>
    tpu.vector_store %arg8[%c0_49, %c0_50, %c0_51, %c0_52], %137 {strides = array<i32>} : memref<1x4x8x16xf32, #tpu.memory_space<vmem>>, vector<1x4x1x16xf32>,
    %138 = vector.extract_strided_slice %133 {offsets = [0, 18], sizes = [4, 16], strides = [1, 1]} : vector<4x144xf32> to vector<4x16xf32>
    %c0_53 = arith.constant 0 : index
    %c0_54 = arith.constant 0 : index
    %c1_55 = arith.constant 1 : index
    %c0_56 = arith.constant 0 : index
    %139 = vector.load %arg8[%c0_53, %c0_54, %c1_55, %c0_56] : memref<1x4x8x16xf32, #tpu.memory_space<vmem>>, vector<1x4x1x16xf32>
    %140 = vector.shape_cast %139 : vector<1x4x1x16xf32> to vector<4x16xf32>
    %141 = vector.shape_cast %138 : vector<4x16xf32> to vector<1x4x1x16xf32>
    tpu.vector_store %arg8[%c0_53, %c0_54, %c1_55, %c0_56], %141 {strides = array<i32>} : memref<1x4x8x16xf32, #tpu.memory_space<vmem>>, vector<1x4x1x16xf32>,
    %142 = vector.extract_strided_slice %133 {offsets = [0, 36], sizes = [4, 16], strides = [1, 1]} : vector<4x144xf32> to vector<4x16xf32>
    %c0_57 = arith.constant 0 : index
    %c0_58 = arith.constant 0 : index
    %c2_59 = arith.constant 2 : index
    %c0_60 = arith.constant 0 : index
    %143 = vector.load %arg8[%c0_57, %c0_58, %c2_59, %c0_60] : memref<1x4x8x16xf32, #tpu.memory_space<vmem>>, vector<1x4x1x16xf32>
    %144 = vector.shape_cast %143 : vector<1x4x1x16xf32> to vector<4x16xf32>
    %145 = vector.shape_cast %142 : vector<4x16xf32> to vector<1x4x1x16xf32>
    tpu.vector_store %arg8[%c0_57, %c0_58, %c2_59, %c0_60], %145 {strides = array<i32>} : memref<1x4x8x16xf32, #tpu.memory_space<vmem>>, vector<1x4x1x16xf32>,
    %146 = vector.extract_strided_slice %133 {offsets = [0, 54], sizes = [4, 16], strides = [1, 1]} : vector<4x144xf32> to vector<4x16xf32>
    %c0_61 = arith.constant 0 : index
    %c0_62 = arith.constant 0 : index
    %c3 = arith.constant 3 : index
    %c0_63 = arith.constant 0 : index
    %147 = vector.load %arg8[%c0_61, %c0_62, %c3, %c0_63] : memref<1x4x8x16xf32, #tpu.memory_space<vmem>>, vector<1x4x1x16xf32>
    %148 = vector.shape_cast %147 : vector<1x4x1x16xf32> to vector<4x16xf32>
    %149 = vector.shape_cast %146 : vector<4x16xf32> to vector<1x4x1x16xf32>
    tpu.vector_store %arg8[%c0_61, %c0_62, %c3, %c0_63], %149 {strides = array<i32>} : memref<1x4x8x16xf32, #tpu.memory_space<vmem>>, vector<1x4x1x16xf32>,
    %150 = vector.extract_strided_slice %133 {offsets = [0, 72], sizes = [4, 16], strides = [1, 1]} : vector<4x144xf32> to vector<4x16xf32>
    %c0_64 = arith.constant 0 : index
    %c0_65 = arith.constant 0 : index
    %c4 = arith.constant 4 : index
    %c0_66 = arith.constant 0 : index
    %151 = vector.load %arg8[%c0_64, %c0_65, %c4, %c0_66] : memref<1x4x8x16xf32, #tpu.memory_space<vmem>>, vector<1x4x1x16xf32>
    %152 = vector.shape_cast %151 : vector<1x4x1x16xf32> to vector<4x16xf32>
    %153 = vector.shape_cast %150 : vector<4x16xf32> to vector<1x4x1x16xf32>
    tpu.vector_store %arg8[%c0_64, %c0_65, %c4, %c0_66], %153 {strides = array<i32>} : memref<1x4x8x16xf32, #tpu.memory_space<vmem>>, vector<1x4x1x16xf32>,
    %154 = vector.extract_strided_slice %133 {offsets = [0, 90], sizes = [4, 16], strides = [1, 1]} : vector<4x144xf32> to vector<4x16xf32>
    %c0_67 = arith.constant 0 : index
    %c0_68 = arith.constant 0 : index
    %c5 = arith.constant 5 : index
    %c0_69 = arith.constant 0 : index
    %155 = vector.load %arg8[%c0_67, %c0_68, %c5, %c0_69] : memref<1x4x8x16xf32, #tpu.memory_space<vmem>>, vector<1x4x1x16xf32>
    %156 = vector.shape_cast %155 : vector<1x4x1x16xf32> to vector<4x16xf32>
    %157 = vector.shape_cast %154 : vector<4x16xf32> to vector<1x4x1x16xf32>
    tpu.vector_store %arg8[%c0_67, %c0_68, %c5, %c0_69], %157 {strides = array<i32>} : memref<1x4x8x16xf32, #tpu.memory_space<vmem>>, vector<1x4x1x16xf32>,
    %158 = vector.extract_strided_slice %133 {offsets = [0, 108], sizes = [4, 16], strides = [1, 1]} : vector<4x144xf32> to vector<4x16xf32>
    %c0_70 = arith.constant 0 : index
    %c0_71 = arith.constant 0 : index
    %c6 = arith.constant 6 : index
    %c0_72 = arith.constant 0 : index
    %159 = vector.load %arg8[%c0_70, %c0_71, %c6, %c0_72] : memref<1x4x8x16xf32, #tpu.memory_space<vmem>>, vector<1x4x1x16xf32>
    %160 = vector.shape_cast %159 : vector<1x4x1x16xf32> to vector<4x16xf32>
    %161 = vector.shape_cast %158 : vector<4x16xf32> to vector<1x4x1x16xf32>
    tpu.vector_store %arg8[%c0_70, %c0_71, %c6, %c0_72], %161 {strides = array<i32>} : memref<1x4x8x16xf32, #tpu.memory_space<vmem>>, vector<1x4x1x16xf32>,
    %162 = vector.extract_strided_slice %133 {offsets = [0, 126], sizes = [4, 16], strides = [1, 1]} : vector<4x144xf32> to vector<4x16xf32>
    %c0_73 = arith.constant 0 : index
    %c0_74 = arith.constant 0 : index
    %c7 = arith.constant 7 : index
    %c0_75 = arith.constant 0 : index
    %163 = vector.load %arg8[%c0_73, %c0_74, %c7, %c0_75] : memref<1x4x8x16xf32, #tpu.memory_space<vmem>>, vector<1x4x1x16xf32>
    %164 = vector.shape_cast %163 : vector<1x4x1x16xf32> to vector<4x16xf32>
    %165 = vector.shape_cast %162 : vector<4x16xf32> to vector<1x4x1x16xf32>
    tpu.vector_store %arg8[%c0_73, %c0_74, %c7, %c0_75], %165 {strides = array<i32>} : memref<1x4x8x16xf32, #tpu.memory_space<vmem>>, vector<1x4x1x16xf32>,
    return
  }
  func.func @transform_0(%arg0: i32, %arg1: i32) -> (i32, i32, i32, i32) {
    %c0_i32 = arith.constant 0 : i32
    %c0_i32_0 = arith.constant 0 : i32
    %c0_i32_1 = arith.constant 0 : i32
    return %arg0, %arg1, %c0_i32, %c0_i32_0 : i32, i32, i32, i32
  }
  func.func @transform_1(%arg0: i32, %arg1: i32) -> (i32, i32, i32) {
    %c0_i32 = arith.constant 0 : i32
    %c0_i32_0 = arith.constant 0 : i32
    %c0_i32_1 = arith.constant 0 : i32
    %c0_i32_2 = arith.constant 0 : i32
    return %c0_i32, %c0_i32_0, %c0_i32_1 : i32, i32, i32
  }
  func.func @transform_2(%arg0: i32, %arg1: i32) -> (i32, i32, i32) {
    %c0_i32 = arith.constant 0 : i32
    %c0_i32_0 = arith.constant 0 : i32
    %c0_i32_1 = arith.constant 0 : i32
    %c0_i32_2 = arith.constant 0 : i32
    return %c0_i32, %c0_i32_0, %c0_i32_1 : i32, i32, i32
  }
  func.func @transform_3(%arg0: i32, %arg1: i32) -> (i32, i32) {
    %c0_i32 = arith.constant 0 : i32
    %c0_i32_0 = arith.constant 0 : i32
    %c0_i32_1 = arith.constant 0 : i32
    return %c0_i32, %c0_i32_0 : i32, i32
  }
  func.func @transform_4(%arg0: i32, %arg1: i32) -> (i32, i32) {
    %c0_i32 = arith.constant 0 : i32
    %c0_i32_0 = arith.constant 0 : i32
    %c0_i32_1 = arith.constant 0 : i32
    return %c0_i32, %c0_i32_0 : i32, i32
  }
  func.func @transform_5(%arg0: i32, %arg1: i32) -> (i32, i32) {
    %c0_i32 = arith.constant 0 : i32
    %c0_i32_0 = arith.constant 0 : i32
    %c0_i32_1 = arith.constant 0 : i32
    return %c0_i32, %c0_i32_0 : i32, i32
  }
  func.func @transform_6(%arg0: i32, %arg1: i32) -> (i32, i32, i32, i32) {
    %c0_i32 = arith.constant 0 : i32
    %c0_i32_0 = arith.constant 0 : i32
    %c0_i32_1 = arith.constant 0 : i32
    return %arg0, %c0_i32, %arg1, %c0_i32_0 : i32, i32, i32, i32
  }
}

</mosaic_0001>

<bundles_post_ra>
// kernel: dmlp_pallas.1
= control target key start
LH: loop header
LB: loop body
LE: loop exit
PB: predicated region body
PF: predicated region fallthrough
CT: control target
= control target key end

     0   :  { %11 = vsyncpa [#allocation3], 0  ;;  %s1748_s0 = inlined_call_operand.vmem [shape: f32[2,2,4,198], index: 0, kind: input, shape index: {}]   ;;  %s1749_s1 = inlined_call_operand.vmem [shape: f32[2,4,9], index: 1, kind: input, shape index: {}]   ;;  %s1750_s2 = inlined_call_operand.vmem [shape: f32[2,8,4], index: 2, kind: input, shape index: {}]   ;;  %s1751_s3 = inlined_call_operand.vmem [shape: f32[8,1], index: 3, kind: input, shape index: {}]   ;;  %s1752_s4 = inlined_call_operand.vmem [shape: f32[4,8], index: 4, kind: input, shape index: {}]   ;;  %s1753_s5 = inlined_call_operand.vmem [shape: f32[4,1], index: 5, kind: input, shape index: {}]   ;;  %s1754_s6 = inlined_call_operand.hbm [shape: f32[2,4,16,16], index: 6, kind: output, shape index: {}]  }
   0x1   :  { %13 = vsyncpa [#allocation3 + $0x1], 0  ;;  %s1419_s21 = smov 0   ;;  %s1421_s22 = smov 0  }
   0x2   :  { %s1423_s23 = smov 0   ;;  %s1425_s24 = smov 0  }
   0x3   :  { %s1427_s25 = smov 0   ;;  %s1429_s26 = smov 0  }
   0x4   :  { %s1431_s27 = smov 0   ;;  %s1433_s28 = smov 0  }
   0x5 LB: > { %s1115_s29 = sadd.s32 4294967295, %s1354_s28   ;;  %s1116_s30 = sadd.s32 4294967294, %s1354_s28   ;;  %s1354_s28 = sphi %s1433_s28, %s19_s28   ;;  %s1350_s27 = sphi %s1431_s27, %s1763_s27   ;;  %s1346_s26 = sphi %s1429_s26, %s1762_s26   ;;  %s1342_s25 = sphi %s1427_s25, %s1761_s25   ;;  %s1338_s24 = sphi %s1425_s24, %s1760_s24   ;;  %s1334_s23 = sphi %s1423_s23, %s1759_s23   ;;  %s1330_s22 = sphi %s1421_s22, %s1758_s22   ;;  %s1326_s21 = sphi %s1419_s21, %s1757_s21  }
   0x6   : > { %s28_s7 = sadd.s32 1, %s1346_s26  ;;  %s31_s8 = sadd.s32 1, %s1350_s27 }
   0x7   : > { %p29_p0 = scmp.ge.s32.totalorder %s28_s7, 2  ;;  %p183_p1 = scmp.ne.s32.totalorder %s1334_s23, %s1330_s22 }
   0x8   : > { %p184_p2 = scmp.eq.s32.totalorder %s1115_s29, 3  ;;  %p189_p5 = scmp.ne.s32.totalorder %s1330_s22, %s1326_s21 }
   0x9   : > { %s1765_s7 = smov (%p29_p0, %s28_s7), 0  ;;  %s1767_s8 = smov (!%p29_p0, %s31_s8), %s1350_s27 }
   0xa   : > { %s169_s9 = ssub.s32 %s1346_s26, %s1765_s7  ;;  %p1470_p3 = por %p184_p2, %p183_p1 }
   0xb   : > { %p33_p4 = scmp.ge.s32.totalorder %s1767_s8, 2  ;;  %p190_p6 = scmp.eq.s32.totalorder %s1116_s30, 3 }
   0xc   : > { %p1119_p7 = scmp.ge.s32.totalorder %s1354_s28, 1  ;;  %p235_p9 = scmp.lt.s32.totalorder %s1354_s28, 5 }
   0xd   : > { %s1769_s8 = smov (%p33_p4, %s1767_s8), 0  ;;  %p1479_p8 = por %p190_p6, %p189_p5 }
   0xe   : > { %s168_s12 = ssub.s32 %s1350_s27, %s1769_s8  ;;  %s173_s13 = sadd.s32 1, %s1334_s23 }
   0xf   : > { %s170_s14 = sor.u32 %s169_s9, %s168_s12  ;;  %p236_p10 = pnand %p1119_p7, %p235_p9 }
  0x10   : > { %p171_p11 = scmp.eq.s32.totalorder %s170_s14, 0  ;;  %v1493_v0 = vld [vmem:[%s1749_s1 + $0x4] sm:$0xf] (!%p236_p10)  ;;  %v1356_v1 = vmov (!%p236_p10), 2   ;;  %v1357_v2 = vmov (!%p236_p10), 1   ;;  %p269_p12 = scmp.lt.s32.totalorder (!%p236_p10), %s1342_s25, 1 }
  0x11   : > { %239 = sbr.rel (%p236_p10) target bundleno = 888 (0x378), region = 44  ;;  %1239 = vset.pattern.permute.xlu1 (!%p236_p10), %v1356_v1  ;;  %1237 = vset.pattern.permute.xlu0 (!%p236_p10), %v1357_v2  ;;  %p271_p13 = scmp.lt.s32.totalorder (!%p236_p10), %s1338_s24, 1  ;;  %v1358_v3 = vmov (!%p236_p10), 3   ;;  %v1359_v4 = vmov (!%p236_p10), 0   ;;  %v1360_v6 = vmov (!%p236_p10), 4   ;;  %v1363_v9 = vmov (!%p236_p10), 5  }
  0x12   : > { %s1488_s15 = scalar_select %p171_p11, %s1334_s23, %s173_s13  }
  0x13   : > { %349 = vperm.xlu1 (!%p236_p10), %1239, %v1493_v0   ;;  %322 = vperm.xlu0 (!%p236_p10), %1237, %v1493_v0   ;;  %s1361_s16 = smov (!%p236_p10), 127   ;;  %v278_v8 = vld [vmem:[%s1749_s1] sm:$0xf] (!%p236_p10)  ;;  %v1365_v10 = vmov (!%p236_p10), 6   ;;  %v1369_v11 = vmov (!%p236_p10), 8   ;;  %v1370_v12 = vmov (!%p236_p10), 7  }
  0x14   : > { %s1371_s12 = smov (!%p236_p10), 91   ;;  %s1372_s13 = smov (!%p236_p10), 90   ;;  %v1373_v13 = vmov (!%p236_p10), 0.0   ;;  %v683_v14 = vld [vmem:[%s1751_s3] sm:$0xff] (!%p236_p10)  ;;  %vm313_vm0 = vcmask (!%p236_p10), 1039360   ;;  %vm340_vm1 = vcmask (!%p236_p10), 1031168  }
  0x15   : > { %596 = vmatprep.mubr.f32.mxu0 (!%p236_p10), %v1373_v13  ;;  %776 = vmatprep.mubr.f32.mxu1 (!%p236_p10), %v1373_v13  ;;  %v702_v15 = vld [vmem:[%s1753_s5] sm:$0xf] (!%p236_p10)  ;;  %vm367_vm2 = vcmask (!%p236_p10), 900096   ;;  %vm394_vm3 = vcmask (!%p236_p10), 891904   ;;  %vm421_vm4 = vcmask (!%p236_p10), 883712   ;;  %vm448_vm5 = vcmask (!%p236_p10), 752640  }
  0x16   : > { %vm475_vm6 = vcmask (!%p236_p10), 744448   ;;  %vm502_vm7 = vcmask (!%p236_p10), 736256   ;;  %vm525_vm8 = vcmask (!%p236_p10), 1043456   ;;  %vm521_vm9 = vcmask (!%p236_p10), 31744  }
  0x17   : > { %1240 = vset.pattern.permute.xlu1 (!%p236_p10), %v1358_v3  ;;  %1238 = vset.pattern.permute.xlu0 (!%p236_p10), %v1359_v4  ;;  %vm708_vm10 = vcmask (!%p236_p10), 64512   ;;  %vm812_vm11 = vcmask (!%p236_p10), 122880   ;;  %vm1003_vm12 = vcmask (!%p236_p10), 15360  }
  0x18   : > { %s270_s18 = scalar_select %p269_p12, %s1342_s25, 1  ;;  %376 = vperm.xlu1 %1240, %v1493_v0   ;;  %295 = vperm.xlu0 %1238, %v1493_v0  }
  0x19   : > { %s272_s19 = scalar_select %p271_p13, %s1338_s24, 1 }
  0x1a   : > { %s1122_s20 = sshll.u32 %s270_s18, 2 }
  0x1b   : > { %s1121_s29 = sshll.u32 %s272_s19, 1  ;;  %s1362_s19 = smov 126  }
  0x1c   : > { %s275_s30 = sadd.s32 %s1122_s20, %s1121_s29  ;;  %1241 = vset.pattern.permute.xlu1 %v1360_v6  ;;  %s1364_s20 = smov 110  }
  0x1d   : > { %s1123_s9 = sshll.u32 %s275_s30, 2  ;;  %403 = vperm.xlu1 %1241, %v1493_v0   ;;  %s1366_s29 = smov 108  }
  0x1e   : > { %s277_s14 = scalar_lea.vmem %s1748_s0, %s1123_s9  ;;  %s1367_s30 = smov 92  }
  0x1f   : > { %v1506_v5 = vld [vmem:[%s277_s14] sm:$0xff]  ;;  %s1368_s9 = smov 109  }
  0x20   : > { %309 = vrot.lane.b32.xlu0 %v1506_v5, %s1361_s16  ;;  %v1511_v7 = vcombine.high %v1506_v5, %v1506_v5 }
  0x21   : > { %1242 = vset.pattern.permute.xlu1 %v1357_v2 }
  0x22   : > { %311 = vrot.lane.b32.xlu1 %v1511_v7, %s1361_s16  ;;  %s266_s16 = sand.u32 1, %s1330_s22  }
  0x23   : > { %s1120_s17 = sshll.u32 %s266_s16, 5 }
  0x24   : > { %283 = vperm.xlu0 %1238, %v278_v8   ;;  %s1594_s18 = scalar_lea.vmem [#allocation2], %s1120_s17 }
  0x25   : > { %s1031_s17 = sshll.u32 %s1594_s18, 4  ;;  %s1688_s17 = int_to_ptr.vmem [resolvable:$true] %s1031_s17 }
  0x26   : > { %304 = vperm.xlu1 %1242, %v278_v8  }
  0x28   : > { %336 = vrot.lane.b32.xlu0 %v1506_v5, %s1362_s19 }
  0x29   : > { %1244 = vset.pattern.permute.xlu0 %v1356_v1 }
  0x2a   : > { %1243 = vset.pattern.permute.xlu1 %v1363_v9 }
  0x2b   : > { %430 = vperm.xlu1 %1243, %v1493_v0  }
  0x2c   : > { %331 = vperm.xlu0 %1244, %v278_v8  }
  0x2f   : > { %338 = vrot.lane.b32.xlu1 %v1511_v7, %s1362_s19  ;;  %s1375_s19 = smov 74  }
  0x30   : > { %365 = vrot.lane.b32.xlu0 %v1511_v7, %s1364_s20  ;;  %1245 = vset.pattern.permute.xlu1 %v1365_v10 }
  0x31   : > { %1247 = vset.pattern.permute.xlu0 %v1360_v6 }
  0x33   : > { %457 = vperm.xlu1 %1245, %v1493_v0  }
  0x34   : > { %385 = vperm.xlu0 %1247, %v278_v8  }
  0x37   : > { %363 = vrot.lane.b32.xlu1 %v1506_v5, %s1364_s20 }
  0x38   : > { %419 = vrot.lane.b32.xlu0 %v1511_v7, %s1366_s29  ;;  %1246 = vset.pattern.permute.xlu1 %v1358_v3 }
  0x39   : > { %1250 = vset.pattern.permute.xlu0 %v1365_v10 }
  0x3b   : > { %358 = vperm.xlu1 %1246, %v278_v8  }
  0x3c   : > { %444 = vrot.lane.b32.xlu0 %v1506_v5, %s1367_s30 }
  0x3f   : > { %390 = vrot.lane.b32.xlu1 %v1506_v5, %s1368_s9 }
  0x40   : > { %439 = vperm.xlu0 %1250, %v278_v8   ;;  %1248 = vset.pattern.permute.xlu1 %v1369_v11 }
  0x43   : > { %392 = vrot.lane.b32.xlu1 %v1511_v7, %s1368_s9  ;;  %s1377_s9 = smov 38  }
  0x44   : > { %1251 = vset.pattern.permute.xlu0 %v1370_v12 }
  0x45   : > { %484 = vperm.xlu0 %1251, %v1493_v0  }
  0x47   : > { %511 = vperm.xlu1 %1248, %v1493_v0  }
  0x49   : > { %466 = vperm.xlu0 %1251, %v278_v8  }
  0x4b   : > { %417 = vrot.lane.b32.xlu1 %v1506_v5, %s1366_s29  ;;  %s1376_s29 = smov 56  }
  0x4c   : > { %1249 = vset.pattern.permute.xlu1 %v1363_v9 }
  0x4d   : > { %1252 = vset.pattern.permute.xlu0 %v1369_v11 }
  0x4e   : > { %493 = vperm.xlu0 %1252, %v278_v8  }
  0x4f   : > { %412 = vperm.xlu1 %1249, %v278_v8  }
  0x52   : > { %1254 = vset.pattern.permute.xlu0 %v1359_v4 }
  0x53   : > { %446 = vrot.lane.b32.xlu1 %v1511_v7, %s1367_s30 }
  0x54   : > { %1253 = vset.pattern.permute.xlu1 %v1359_v4 }
  0x57   : > { %471 = vrot.lane.b32.xlu1 %v1506_v5, %s1371_s12 }
  0x5b   : > { %473 = vrot.lane.b32.xlu1 %v1511_v7, %s1371_s12  ;;  %s1378_s12 = smov 20  }
  0x5f   : > { %498 = vrot.lane.b32.xlu1 %v1506_v5, %s1372_s13 }
  0x63   : > { %500 = vrot.lane.b32.xlu1 %v1511_v7, %s1372_s13  ;;  %s1379_s13 = smov 2  }
  0x67   : > { %686 = vperm.xlu1 %1253, %v683_v14  }
  0x6b   : > { %705 = vperm.xlu1 %1253, %v702_v15  }
  0x92   : > { %v350_v16 = vpop.permute.xlu1 %349  ;;  %v323_v17 = vpop.permute.xlu0 %322 }
  0x97   : > { %v377_v18 = vpop.permute.xlu1 %376  ;;  %v296_v20 = vpop.permute.xlu0 %295 }
  0x98   : > { %v299_v41 = vmul.f32 %v1511_v7, %v296_v20  ;;  %v298_v49 = vmul.f32 %v1506_v5, %v296_v20 }
  0x9b   : > { %v310_v22 = vpop.permute.xlu0 %309 }
  0x9c   : > { %v1548_v19 = vpop.permute.xlu1 %403 }
  0xa0   : > { %v312_v21 = vpop.permute.xlu1 %311 }
  0xa1   : > { %v326_v42 = vmul.f32 %v323_v17, %v312_v21  ;;  %v314_v44 = vsel %vm313_vm0, %v310_v22, %v312_v21 }
  0xa2   : > { %v325_v53 = vmul.f32 %v323_v17, %v314_v44 }
  0xa3   : > { %v284_v24 = vpop.permute.xlu0 %283  ;;  %v328_v50 = vadd.f32 %v326_v42, %v299_v41 }
  0xa4   : > { %v290_v46 = vmul.f32 %v1511_v7, %v284_v24  ;;  %v289_v52 = vmul.f32 %v1506_v5, %v284_v24  ;;  %v327_v4 = vadd.f32 %v325_v53, %v298_v49 }
  0xa5   : > { %v305_v23 = vpop.permute.xlu1 %304 }
  0xa6   : > { %v318_v47 = vmul.f32 %v312_v21, %v305_v23  ;;  %v317_v54 = vmul.f32 %v314_v44, %v305_v23 }
  0xa7   : > { %v337_v27 = vpop.permute.xlu0 %336 }
  0xa8   : > { %v320_v58 = vadd.f32 %v318_v47, %v290_v46  ;;  %v319_v3 = vadd.f32 %v317_v54, %v289_v52 }
  0xaa   : > { %v1550_v25 = vpop.permute.xlu1 %430 }
  0xab   : > { %v332_v29 = vpop.permute.xlu0 %331 }
  0xae   : > { %v339_v26 = vpop.permute.xlu1 %338 }
  0xaf   : > { %v366_v32 = vpop.permute.xlu0 %365  ;;  %v353_v45 = vmul.f32 %v350_v16, %v339_v26  ;;  %v341_v51 = vsel %vm340_vm1, %v337_v27, %v339_v26  ;;  %v345_v55 = vmul.f32 %v339_v26, %v332_v29 }
  0xb0   : > { %v344_v59 = vmul.f32 %v341_v51, %v332_v29  ;;  %v352_v60 = vmul.f32 %v350_v16, %v341_v51  ;;  %v380_v63 = vmul.f32 %v377_v18, %v366_v32 }
  0xb1   : > { %v355_v56 = vadd.f32 %v353_v45, %v328_v50  ;;  %v347_v5 = vadd.f32 %v345_v55, %v320_v58 }
  0xb2   : > { %v1552_v28 = vpop.permute.xlu1 %457  ;;  %v354_v11 = vadd.f32 %v352_v60, %v327_v4  ;;  %v346_v12 = vadd.f32 %v344_v59, %v319_v3 }
  0xb3   : > { %v386_v34 = vpop.permute.xlu0 %385  ;;  %v382_v8 = vadd.f32 %v380_v63, %v355_v56 }
  0xb6   : > { %v364_v30 = vpop.permute.xlu1 %363 }
  0xb7   : > { %v420_v37 = vpop.permute.xlu0 %419  ;;  %v368_v57 = vsel %vm367_vm2, %v364_v30, %v366_v32 }
  0xb8   : > { %v379_v6 = vmul.f32 %v377_v18, %v368_v57  ;;  %v434_v22 = vmul.f32 %v1550_v25, %v420_v37 }
  0xba   : > { %v359_v31 = vpop.permute.xlu1 %358  ;;  %v381_v23 = vadd.f32 %v379_v6, %v354_v11 }
  0xbb   : > { %v445_v39 = vpop.permute.xlu0 %444  ;;  %v372_v0 = vmul.f32 %v366_v32, %v359_v31  ;;  %v371_v7 = vmul.f32 %v368_v57, %v359_v31 }
  0xbd   : > { %v374_v16 = vadd.f32 %v372_v0, %v347_v5  ;;  %v373_v27 = vadd.f32 %v371_v7, %v346_v12 }
  0xbe   : > { %v391_v33 = vpop.permute.xlu1 %390 }
  0xbf   : > { %v1557_v43 = vpop.permute.xlu0 %439 }
  0xc2   : > { %v393_v35 = vpop.permute.xlu1 %392 }
  0xc3   : > { %v395_v1 = vsel %vm394_vm3, %v391_v33, %v393_v35  ;;  %v407_v2 = vmul.f32 %v1548_v19, %v393_v35  ;;  %v399_v9 = vmul.f32 %v393_v35, %v386_v34 }
  0xc4   : > { %v485_v61 = vpop.permute.xlu0 %484  ;;  %v406_v14 = vmul.f32 %v1548_v19, %v395_v1  ;;  %v398_v17 = vmul.f32 %v395_v1, %v386_v34 }
  0xc5   : > { %v409_v20 = vadd.f32 %v407_v2, %v382_v8  ;;  %v401_v29 = vadd.f32 %v399_v9, %v374_v16  ;;  %v701_v16 = vld [vmem:[%s1752_s4] sm:$0xf] }
  0xc6   : > { %v1554_v36 = vpop.permute.xlu1 %511  ;;  %v408_v19 = vadd.f32 %v406_v14, %v381_v23 }
  0xc7   : > { %v436_v41 = vadd.f32 %v434_v22, %v409_v20 }
  0xc8   : > { %v467_v26 = vpop.permute.xlu0 %466 }
  0xca   : > { %v418_v38 = vpop.permute.xlu1 %417 }
  0xcb   : > { %v422_v10 = vsel %vm421_vm4, %v418_v38, %v420_v37  ;;  %v400_v38 = vadd.f32 %v398_v17, %v373_v27  ;;  %v1374_v17 = vmov 1966171168  }
  0xcc   : > { %v433_v18 = vmul.f32 %v1550_v25, %v422_v10  ;;  %v785_v20 = vunpack.c.l.s4 %v1374_v17 }
  0xcd   : > { %v494_v45 = vpop.permute.xlu0 %493 }
  0xce   : > { %v413_v40 = vpop.permute.xlu1 %412  ;;  %v435_v42 = vadd.f32 %v433_v18, %v408_v19  ;;  %v786_v22 = vunpack.c.0.s8 %v785_v20 }
  0xcf   : > { %v426_v24 = vmul.f32 %v420_v37, %v413_v40  ;;  %v425_v32 = vmul.f32 %v422_v10, %v413_v40 }
  0xd1   : > { %v428_v25 = vadd.f32 %v426_v24, %v401_v29  ;;  %v427_v49 = vadd.f32 %v425_v32, %v400_v38 }
  0xd2   : > { %v447_v48 = vpop.permute.xlu1 %446 }
  0xd3   : > { %v449_v21 = vsel %vm448_vm5, %v445_v39, %v447_v48  ;;  %v461_v30 = vmul.f32 %v1552_v28, %v447_v48  ;;  %v453_v33 = vmul.f32 %v447_v48, %v1557_v43 }
  0xd4   : > { %v460_v34 = vmul.f32 %v1552_v28, %v449_v21  ;;  %v452_v37 = vmul.f32 %v449_v21, %v1557_v43  ;;  %v787_v21 = vlaneseq }
  0xd5   : > { %v463_v47 = vadd.f32 %v461_v30, %v436_v41  ;;  %v455_v40 = vadd.f32 %v453_v33, %v428_v25 }
  0xd6   : > { %v472_v62 = vpop.permute.xlu1 %471  ;;  %v462_v50 = vadd.f32 %v460_v34, %v435_v42  ;;  %v454_v55 = vadd.f32 %v452_v37, %v427_v49  ;;  %v788_v23 = vshrl.u32 %v787_v21, 7 }
  0xd8   : > { %v789_v18 = vsub.s32 %v786_v22, %v788_v23  ;;  %v1592_v19 = vsub.s32 0, %v788_v23 }
  0xda   : > { %v474_v15 = vpop.permute.xlu1 %473 }
  0xdb   : > { %v476_v31 = vsel %vm475_vm6, %v472_v62, %v474_v15  ;;  %v488_v39 = vmul.f32 %v485_v61, %v474_v15  ;;  %v480_v46 = vmul.f32 %v474_v15, %v467_v26  ;;  %v1124_v62 = vld [vmem:[%s1750_s2 + $0x8] sm:$0xff] }
  0xdc   : > { %v487_v44 = vmul.f32 %v485_v61, %v476_v31  ;;  %v479_v48 = vmul.f32 %v476_v31, %v467_v26 }
  0xdd   : > { %v490_v53 = vadd.f32 %v488_v39, %v463_v47  ;;  %v482_v58 = vadd.f32 %v480_v46, %v455_v40 }
  0xde   : > { %v499_v35 = vpop.permute.xlu1 %498  ;;  %v489_v43 = vadd.f32 %v487_v44, %v462_v50  ;;  %v481_v60 = vadd.f32 %v479_v48, %v454_v55  ;;  %v961_v44 = vsub.s32 1, %v788_v23 }
  0xe2   : > { %v501_v51 = vpop.permute.xlu1 %500 }
  0xe3   : > { %v503_v28 = vsel %vm502_vm7, %v499_v35, %v501_v51  ;;  %v507_v52 = vmul.f32 %v501_v51, %v494_v45  ;;  %v515_v54 = vmul.f32 %v1554_v36, %v501_v51 }
  0xe4   : > { %v506_v56 = vmul.f32 %v503_v28, %v494_v45  ;;  %v514_v57 = vmul.f32 %v1554_v36, %v503_v28  ;;  %v518_v36 = vld [vmem:[%s1750_s2] sm:$0xff] }
  0xe5   : > { %v517_v59 = vadd.f32 %v515_v54, %v490_v53  ;;  %v509_v63 = vadd.f32 %v507_v52, %v482_v58 }
  0xe6   : > { %v516_v61 = vadd.f32 %v514_v57, %v489_v43  ;;  %v508_v0 = vadd.f32 %v506_v56, %v481_v60  ;;  %v687_v1 = vpop.permute.xlu1 %686 }
  0xe7   : > { %1125 = vmatprep.subr.msk.mxu0 %vm525_vm8, %v517_v59 }
  0xe8   : > { %1126 = vmatpush1.msk.msra.mxu0 %vm525_vm8, %v516_v61 }
  0xe9   : > { %1127 = vmatmul.mubr.msk.f32.vlgmr.msra.gmra.mrb[0].mxu0 %vm521_vm9, %v1124_v62  ;;  %1128 = vmatprep.subr.msk.mxu0 %vm525_vm8, %v509_v63 }
  0xea   : > { %1129 = vmatpush1.msk.msra.mxu0 %vm525_vm8, %v508_v0  ;;  %676 = vmatprep.mubr.f32.mxu0 %v1373_v13  ;;  %v706_v24 = vpop.permute.xlu1 %705 }
  0xf1   : > { %1130 = vmatmul.mubr.msk.f32.vlgmr.msra.gmra.mrb[0].mxu0 %vm521_vm9, %v518_v36 }
 0x1c4   : > { %v678_v2 = vpop.f32.mrb[0].mxu0 }
 0x1c5   : > { %v689_v3 = vadd.f32 %v687_v1, %v678_v2  ;;  %v680_v4 = vpop.f32.mrb[1].mxu0 }
 0x1c6   : > { %v690_v5 = vadd.f32 %v687_v1, %v680_v4 }
 0x1c7   : > { %v693_v6 = vmul.f32 0.70710677, %v689_v3  ;;  %v691_v12 = vmul.f32 0.5, %v689_v3 }
 0x1c8   : > { %v694_v7 = vmul.f32 0.70710677, %v690_v5  ;;  %v692_v11 = vmul.f32 0.5, %v690_v5 }
 0x1c9   : > { %1256 = verf.f32 %v693_v6 }
 0x1ca   : > { %1258 = verf.f32 %v694_v7 }
 0x1d3   : > { %v1257_v8 = vpop.eup %1256 }
 0x1d4   : > { %v1259_v9 = vpop.eup %1258  ;;  %v697_v10 = vadd.f32 1.0, %v1257_v8 }
 0x1d5   : > { %v698_v13 = vadd.f32 1.0, %v1259_v9 }
 0x1d6   : > { %v699_v15 = vmul.f32 %v697_v10, %v691_v12 }
 0x1d7   : > { %v700_v14 = vmul.f32 %v698_v13, %v692_v11 }
 0x1d9   : > { %712 = vmatprep.subr.mxu1 %v700_v14 }
 0x1da   : > { %713 = vmatpush1.msra.mxu1 %v699_v15 }
 0x1db   : > { %1131 = vmatmul.mubr.msk.f32.vlgmr.msra.gmra.mrb[0].mxu1 %vm708_vm10, %v701_v16 }
 0x2ae   : > { %v778_v26 = vpop.f32.mrb[0].mxu1 }
 0x2af   : > { %v779_v27 = vadd.f32 %v778_v26, %v706_v24  ;;  %v780_v29 = vpop.f32.mrb[1].mxu1 }
 0x2b0   : > { %v781_v30 = vadd.f32 %v780_v29, %v706_v24 }
 0x2b1   : > { %v790_v31 = vrot.slane %v779_v27, %v789_v18 }
 0x2b2   : > { %v930_v32 = vcombine.low %v779_v27, %v781_v30 }
 0x2b3   : > { %v791_v33 = vcombine.high %v790_v31, %v790_v31  ;;  %v798_v34 = vrot.slane %v790_v31, %v789_v18 }
 0x2b4   : > { %v937_v25 = vrot.slane %v930_v32, %v789_v18 }
 0x2b5   : > { %v805_v35 = vrot.slane %v791_v33, %v789_v18  ;;  %v806_v38 = vcombine.high %v798_v34, %v798_v34  ;;  %813 = vst.msk [vmem:[%s1594_s18] sm:$0x1] %vm812_vm11, %v798_v34  ;;  %v820_v39 = vrot.slane %v798_v34, %v1592_v19 }
 0x2b6   : > { %v945_v37 = vrot.slane %v937_v25, %v789_v18  ;;  %v938_v49 = vcombine.high %v937_v25, %v937_v25 }
 0x2b7   : > { %v807_v41 = vcombine.high %v805_v35, %v805_v35  ;;  %814 = vst.msk [vmem:[%s1594_s18 + $0x8] sm:$0x1] %vm812_vm11, %v805_v35  ;;  %815 = vst.msk [vmem:[%s1594_s18 + $0x10] sm:$0x1] %vm812_vm11, %v806_v38  ;;  %v824_v42 = vrot.slane %v805_v35, %v1592_v19  ;;  %833 = vrot.lane.b32.xlu0 %v820_v39, %s1364_s20  ;;  %v828_v45 = vrot.slane %v806_v38, %v1592_v19 }
 0x2b8   : > { %v962_v46 = vrot.slane %v945_v37, %v961_v44  ;;  %v958_v40 = vrot.slane %v945_v37, %v1592_v19  ;;  %v952_v50 = vrot.slane %v938_v49, %v789_v18  ;;  %v953_v51 = vcombine.high %v945_v37, %v945_v37 }
 0x2b9   : > { %816 = vst.msk [vmem:[%s1594_s18 + $0x18] sm:$0x1] %vm812_vm11, %v807_v41  ;;  %835 = vrot.lane.b32.xlu1 %v824_v42, %s1364_s20  ;;  %v832_v47 = vrot.slane %v807_v41, %v1592_v19 }
 0x2ba   : > { %v966_v48 = vrot.slane %v952_v50, %v1592_v19  ;;  %v970_v28 = vrot.slane %v952_v50, %v961_v44  ;;  %v974_v52 = vrot.slane %v953_v51, %v1592_v19  ;;  %v954_v53 = vcombine.high %v952_v50, %v952_v50 }
 0x2bb   : > { %849 = vrot.lane.b32.xlu0 %v820_v39, %s1367_s30  ;;  %v978_v54 = vrot.slane %v953_v51, %v961_v44 }
 0x2bc   : > { %v982_v55 = vrot.slane %v954_v53, %v1592_v19  ;;  %v986_v56 = vrot.slane %v954_v53, %v961_v44 }
 0x2bd   : > { %851 = vrot.lane.b32.xlu1 %v824_v42, %s1367_s30 }
 0x2bf   : > { %865 = vrot.lane.b32.xlu0 %v820_v39, %s1375_s19 }
 0x2c1   : > { %867 = vrot.lane.b32.xlu1 %v824_v42, %s1375_s19 }
 0x2c3   : > { %881 = vrot.lane.b32.xlu0 %v820_v39, %s1376_s29 }
 0x2c5   : > { %883 = vrot.lane.b32.xlu1 %v824_v42, %s1376_s29 }
 0x2c7   : > { %897 = vrot.lane.b32.xlu0 %v820_v39, %s1377_s9 }
 0x2c9   : > { %899 = vrot.lane.b32.xlu1 %v824_v42, %s1377_s9 }
 0x2cb   : > { %913 = vrot.lane.b32.xlu0 %v820_v39, %s1378_s12 }
 0x2cd   : > { %915 = vrot.lane.b32.xlu1 %v824_v42, %s1378_s12 }
 0x2cf   : > { %837 = vrot.lane.b32.xlu0 %v828_v45, %s1364_s20 }
 0x2d1   : > { %989 = vrot.lane.b32.xlu1 %v962_v46, %s1379_s13 }
 0x2d3   : > { %853 = vrot.lane.b32.xlu0 %v828_v45, %s1367_s30 }
 0x2d5   : > { %839 = vrot.lane.b32.xlu1 %v832_v47, %s1364_s20  ;;  %s1133_s20 = sshll.u32 %s1342_s25, 3 }
 0x2d7   : > { %869 = vrot.lane.b32.xlu0 %v828_v45, %s1375_s19 }
 0x2d9   : > { %855 = vrot.lane.b32.xlu1 %v832_v47, %s1367_s30  ;;  %s1028_s30 = sadd.s32 %s1338_s24, %s1133_s20  ;;  %s1696_s24 = scalar_lea.sflag [#allocation3], %s266_s16 }
 0x2da   : > { %s1134_s14 = sshll.u32 %s1028_s30, 7 }
 0x2db   : > { %885 = vrot.lane.b32.xlu0 %v828_v45, %s1376_s29 }
 0x2dd   : > { %871 = vrot.lane.b32.xlu1 %v832_v47, %s1375_s19 }
 0x2df   : > { %901 = vrot.lane.b32.xlu0 %v828_v45, %s1377_s9 }
 0x2e1   : > { %887 = vrot.lane.b32.xlu1 %v832_v47, %s1376_s29  ;;  %s1684_s29 = scalar_lea.hbm %s1754_s6, %s1134_s14 }
 0x2e3   : > { %987 = vrot.lane.b32.xlu0 %v958_v40, %s1379_s13 }
 0x2e5   : > { %903 = vrot.lane.b32.xlu1 %v832_v47, %s1377_s9  ;;  %s1260_s9 = scalar_lea.vmem %s1688_s17, 512 }
 0x2e6   : > { %p1261_p0 = scmp.ne.s32.totalorder %s1688_s17, %s1260_s9 }
 0x2e7   : > { %991 = vrot.lane.b32.xlu0 %v966_v48, %s1379_s13 }
 0x2e8   : > { %p1262_p1 = pnand %p1261_p0, %p1470_p3 }
 0x2e9   : > { %993 = vrot.lane.b32.xlu1 %v970_v28, %s1379_s13 }
 0x2ea   : > { %p1263_p2 = pneg %p1262_p1 }
 0x2eb   : > { %995 = vrot.lane.b32.xlu0 %v974_v52, %s1379_s13 }
 0x2ed   : > { %997 = vrot.lane.b32.xlu1 %v978_v54, %s1379_s13 }
 0x2ef   : > { %999 = vrot.lane.b32.xlu0 %v982_v55, %s1379_s13 }
 0x2f1   : > { %1001 = vrot.lane.b32.xlu1 %v986_v56, %s1379_s13 }
 0x2f3   : > { %917 = vrot.lane.b32.xlu0 %v828_v45, %s1378_s12 }
 0x2f5   : > { %919 = vrot.lane.b32.xlu1 %v832_v47, %s1378_s12  ;;  %s1380_s12 = smov [#allocation2]  }
 0x2f6   : > { %s1264_s13 = sshll.u32 %s1380_s12, 4  ;;  %s1265_s13 = int_to_ptr.vmem [resolvable:$false] %s1264_s13 }
 0x2f7   : > { %s1266_s20 = scalar_lea.vmem %s1265_s13, 1024  ;;  %p1267_p4 = scmp.lt.s32.totalorder %s1688_s17, %s1265_s13 }
 0x2f8   : > { %p1268_p5 = scmp.lt.s32.totalorder %s1266_s20, %s1260_s9 }
 0x2fa   : > { %p1269_p6 = por %p1268_p5, %p1267_p4 }
 0x2fc   : > { %p1270_p7 = pnand %p1269_p6, %p1263_p2 }
 0x329   : > { %v834_v57 = vpop.permute.xlu0 %833 }
 0x32a   : > { %845 = vst.msk [vmem:[%s1594_s18 + $0x1] sm:$0x1] %vm812_vm11, %v834_v57 }
 0x32b   : > { %v836_v43 = vpop.permute.xlu1 %835 }
 0x32c   : > { %846 = vst.msk [vmem:[%s1594_s18 + $0x9] sm:$0x1] %vm812_vm11, %v836_v43 }
 0x32d   : > { %v850_v58 = vpop.permute.xlu0 %849 }
 0x32e   : > { %861 = vst.msk [vmem:[%s1594_s18 + $0x2] sm:$0x1] %vm812_vm11, %v850_v58 }
 0x32f   : > { %v852_v59 = vpop.permute.xlu1 %851 }
 0x330   : > { %862 = vst.msk [vmem:[%s1594_s18 + $0xa] sm:$0x1] %vm812_vm11, %v852_v59 }
 0x331   : > { %v866_v60 = vpop.permute.xlu0 %865 }
 0x332   : > { %877 = vst.msk [vmem:[%s1594_s18 + $0x3] sm:$0x1] %vm812_vm11, %v866_v60 }
 0x333   : > { %v868_v61 = vpop.permute.xlu1 %867 }
 0x334   : > { %878 = vst.msk [vmem:[%s1594_s18 + $0xb] sm:$0x1] %vm812_vm11, %v868_v61 }
 0x335   : > { %v882_v62 = vpop.permute.xlu0 %881 }
 0x336   : > { %893 = vst.msk [vmem:[%s1594_s18 + $0x4] sm:$0x1] %vm812_vm11, %v882_v62 }
 0x337   : > { %v884_v63 = vpop.permute.xlu1 %883 }
 0x338   : > { %894 = vst.msk [vmem:[%s1594_s18 + $0xc] sm:$0x1] %vm812_vm11, %v884_v63 }
 0x339   : > { %v898_v0 = vpop.permute.xlu0 %897 }
 0x33a   : > { %909 = vst.msk [vmem:[%s1594_s18 + $0x5] sm:$0x1] %vm812_vm11, %v898_v0 }
 0x33b   : > { %v900_v36 = vpop.permute.xlu1 %899 }
 0x33c   : > { %910 = vst.msk [vmem:[%s1594_s18 + $0xd] sm:$0x1] %vm812_vm11, %v900_v36 }
 0x33d   : > { %v914_v1 = vpop.permute.xlu0 %913 }
 0x33e   : > { %925 = vst.msk [vmem:[%s1594_s18 + $0x6] sm:$0x1] %vm812_vm11, %v914_v1 }
 0x33f   : > { %v916_v2 = vpop.permute.xlu1 %915 }
 0x340   : > { %926 = vst.msk [vmem:[%s1594_s18 + $0xe] sm:$0x1] %vm812_vm11, %v916_v2 }
 0x341   : > { %v838_v3 = vpop.permute.xlu0 %837 }
 0x342   : > { %847 = vst.msk [vmem:[%s1594_s18 + $0x11] sm:$0x1] %vm812_vm11, %v838_v3 }
 0x343   : > { %v990_v4 = vpop.permute.xlu1 %989 }
 0x345   : > { %v854_v5 = vpop.permute.xlu0 %853 }
 0x346   : > { %863 = vst.msk [vmem:[%s1594_s18 + $0x12] sm:$0x1] %vm812_vm11, %v854_v5 }
 0x347   : > { %v840_v6 = vpop.permute.xlu1 %839 }
 0x348   : > { %848 = vst.msk [vmem:[%s1594_s18 + $0x19] sm:$0x1] %vm812_vm11, %v840_v6 }
 0x349   : > { %v870_v7 = vpop.permute.xlu0 %869 }
 0x34a   : > { %879 = vst.msk [vmem:[%s1594_s18 + $0x13] sm:$0x1] %vm812_vm11, %v870_v7 }
 0x34b   : > { %v856_v8 = vpop.permute.xlu1 %855 }
 0x34c   : > { %864 = vst.msk [vmem:[%s1594_s18 + $0x1a] sm:$0x1] %vm812_vm11, %v856_v8 }
 0x34d   : > { %v886_v9 = vpop.permute.xlu0 %885 }
 0x34e   : > { %895 = vst.msk [vmem:[%s1594_s18 + $0x14] sm:$0x1] %vm812_vm11, %v886_v9 }
 0x34f   : > { %v872_v10 = vpop.permute.xlu1 %871 }
 0x350   : > { %880 = vst.msk [vmem:[%s1594_s18 + $0x1b] sm:$0x1] %vm812_vm11, %v872_v10 }
 0x351   : > { %v902_v11 = vpop.permute.xlu0 %901 }
 0x352   : > { %911 = vst.msk [vmem:[%s1594_s18 + $0x15] sm:$0x1] %vm812_vm11, %v902_v11 }
 0x353   : > { %v888_v13 = vpop.permute.xlu1 %887 }
 0x354   : > { %896 = vst.msk [vmem:[%s1594_s18 + $0x1c] sm:$0x1] %vm812_vm11, %v888_v13 }
 0x355   : > { %v988_v12 = vpop.permute.xlu0 %987 }
 0x356   : > { %v1004_v14 = vsel %vm1003_vm12, %v988_v12, %v990_v4 }
 0x357   : > { %1012 = vst.msk [vmem:[%s1594_s18 + $0x7] sm:$0x1] %vm812_vm11, %v1004_v14  ;;  %v904_v15 = vpop.permute.xlu1 %903 }
 0x358   : > { %912 = vst.msk [vmem:[%s1594_s18 + $0x1d] sm:$0x1] %vm812_vm11, %v904_v15 }
 0x359   : > { %v992_v16 = vpop.permute.xlu0 %991 }
 0x35b   : > { %v994_v17 = vpop.permute.xlu1 %993 }
 0x35c   : > { %v1005_v20 = vsel %vm1003_vm12, %v992_v16, %v994_v17 }
 0x35d   : > { %1013 = vst.msk [vmem:[%s1594_s18 + $0xf] sm:$0x1] %vm812_vm11, %v1005_v20  ;;  %v996_v21 = vpop.permute.xlu0 %995 }
 0x35f   : > { %v998_v22 = vpop.permute.xlu1 %997 }
 0x360   : > { %v1006_v23 = vsel %vm1003_vm12, %v996_v21, %v998_v22 }
 0x361   : > { %1014 = vst.msk [vmem:[%s1594_s18 + $0x17] sm:$0x1] %vm812_vm11, %v1006_v23  ;;  %v1000_v18 = vpop.permute.xlu0 %999 }
 0x363   : > { %v1002_v24 = vpop.permute.xlu1 %1001 }
 0x364   : > { %v1007_v26 = vsel %vm1003_vm12, %v1000_v18, %v1002_v24 }
 0x365   : > { %1015 = vst.msk [vmem:[%s1594_s18 + $0x1f] sm:$0x1] %vm812_vm11, %v1007_v26  ;;  %v918_v27 = vpop.permute.xlu0 %917 }
 0x366   : > { %927 = vst.msk [vmem:[%s1594_s18 + $0x16] sm:$0x1] %vm812_vm11, %v918_v27 }
 0x367   : > { %v920_v29 = vpop.permute.xlu1 %919 }
 0x368   : > { %928 = vst.msk [vmem:[%s1594_s18 + $0x1e] sm:$0x1] %vm812_vm11, %v920_v29 }
 0x369   : > { %1273 = shalt.err (!%p1270_p7)
}
 0x36a   : > { %s1274_s16 = scalar_lea.hbm %s1684_s29, 512  ;;  %s1278_s14 = scalar_lea.hbm %s1754_s6, 2048 }
 0x36b   : > { %p1275_p9 = scmp.ne.s32.totalorder %s1684_s29, %s1274_s16  ;;  %p1279_p12 = scmp.lt.u32.totalorder %s1684_s29, %s1754_s6 }
 0x36c   : > { %p1280_p13 = scmp.lt.u32.totalorder %s1278_s14, %s1274_s16  ;;  %p1282_p1 = scmp.lt.u32.totalorder %s1274_s16, %s1684_s29 }
 0x36d   : > { %p1276_p10 = pnand %p1275_p9, %p1470_p3 }
 0x36e   : > { %p1281_p0 = por %p1280_p13, %p1279_p12 }
 0x36f   : > { %p1277_p11 = pneg %p1276_p10 }
 0x370   : > { %p1283_p2 = por %p1282_p1, %p1281_p0 }
 0x372   : > { %p1284_p4 = pnand %p1283_p2, %p1277_p11 }
 0x374   : > { %1287 = shalt.err (!%p1284_p4)
}
 0x375   : > { %s1381_s9 = smov 128   ;;  %s1382_s12 = smov 256  }
 0x376   : > { %s1383_s13 = smov 8  }
 0x377   : > { %1139 = dma.vmem_to_hbm [thread:$0]  (%p1470_p3), %s1688_s17, 512, %s1684_s29, %s1696_s24, %s1381_s9, %s1382_s12, %s1383_s13  }
 0x378 PF: > { %p1145_p5 = scmp.ge.s32.totalorder %s1354_s28, 2  ;;  %s1046_s20 = sand.u32 1, %s1326_s21  }
 0x379   : > { %s1047_s16 = scalar_lea.sflag [#allocation3], %s1046_s20 }
 0x37a   : > { %p1142_p6 = pnand %p1145_p5, %p1479_p8 }
 0x37c   : > { %1321 = dma.done.wait (!%p1142_p6), %s1047_s16, 512  }
 0x37d   : > { %1323 = vsyncadd (!%p1142_p6), %s1047_s16, 4294966784  ;;  %s19_s28 = sadd.s32 1, %s1354_s28   ;;  %s1757_s21 = smov %s1330_s22 }
 0x37e   : > { %p16_p7 = scmp.ge.s32.totalorder %s19_s28, 6   ;;  %s1758_s22 = smov %s1334_s23 }
 0x37f   : > { %s1759_s23 = smov %s1488_s15  ;;  %s1760_s24 = smov %s1346_s26 }
 0x380   : > { %s1761_s25 = smov %s1350_s27  ;;  %s1762_s26 = smov %s1765_s7 }
 0x381   : > { %s1763_s27 = smov %s1769_s8  ;;  %18 = sbr.rel (!%p16_p7) target bundleno = 5 (0x5), region = 80 }
 0x388   :  { %1052 = vsyncpa [#allocation3], 1 }
 0x389   :  { %1054 = vsyncpa [#allocation3 + $0x1], 1 }

</bundles_post_ra>
